<compile_context>
chip_gen: v7x
topology: tpu7x:2x2x1
jax: 0.10.0
libtpu: 0.0.40
codegen_flags: <defaults>
</compile_context>

<pallas_src>
import functools

import jax
import jax.numpy as jnp
from jax.experimental import pallas as pl
from jax.experimental.pallas import tpu as pltpu

_SUBLANE = 8  # f32 sublane width (second-to-last dim granularity)


def _round_up(x, m):
    return (x + m - 1) // m * m


def _encoder_kernel(*refs, num_hidden):
    """Fused VAE-encoder forward for one batch tile.

    refs = (x, eps,
            w0, b0, ..., w_{H-1}, b_{H-1},        # hidden Linear+ELU layers
            w_mean, b_mean, w_std, b_std,          # split last Linear
            sample_ref, mean_ref, std_ref)         # outputs
    Shapes: x [TB, K0], eps [TB, L], w_l [K_l, N_l], b_l [1, N_l],
            heads [K_last, L] / [1, L], outputs [TB, L].
    """
    x_ref, eps_ref = refs[0], refs[1]
    sample_ref, mean_ref, std_ref = refs[-3], refs[-2], refs[-1]

    h = x_ref[...].astype(jnp.float32)
    for l in range(num_hidden):
        w = refs[2 + 2 * l][...]
        b = refs[3 + 2 * l][...]
        h = jnp.dot(h, w, preferred_element_type=jnp.float32) + b
        # ELU(alpha=1): x if x>0 else exp(x)-1; clamp the exp argument so the
        # unselected branch never produces inf (safe if reused under autodiff).
        h = jnp.where(h > 0, h, jnp.exp(jnp.minimum(h, 0.0)) - 1.0)

    w_mean = refs[2 + 2 * num_hidden][...]
    b_mean = refs[3 + 2 * num_hidden][...]
    w_std = refs[4 + 2 * num_hidden][...]
    b_std = refs[5 + 2 * num_hidden][...]

    mean = jnp.dot(h, w_mean, preferred_element_type=jnp.float32) + b_mean
    # exp only sees the std logits (separate head) -> no overflow on mean lanes.
    std = jnp.exp(jnp.dot(h, w_std, preferred_element_type=jnp.float32) + b_std)
    sample = mean + std * eps_ref[...].astype(jnp.float32)

    mean_ref[...] = mean.astype(mean_ref.dtype)
    std_ref[...] = std.astype(std_ref.dtype)
    sample_ref[...] = sample.astype(sample_ref.dtype)


def init_encoder_params(key, input_dim, latent_dim, mid_dims, dtype=jnp.float32):
    """PyTorch nn.Linear-style uniform init; weights stored as [in, out]."""
    dims = [input_dim] + list(mid_dims) + [2 * latent_dim]
    params = []
    for i in range(len(dims) - 1):
        fan_in, fan_out = dims[i], dims[i + 1]
        key, kw, kb = jax.random.split(key, 3)
        bound = 1.0 / (fan_in ** 0.5)
        w = jax.random.uniform(kw, (fan_in, fan_out), dtype, -bound, bound)
        b = jax.random.uniform(kb, (fan_out,), dtype, -bound, bound)
        params.append((w, b))
    return params


def prep_encoder_params(params, latent_dim):
    """Reshape biases to [1, N] and split the last Linear into mean / std heads
    so each kernel output is lane-contiguous from column 0 (no post-kernel
    mid-vreg slicing). No feature padding: every block is passed at full array
    extent, which satisfies the (8, 128) BlockSpec rule."""
    *hidden, (w_last, b_last) = params
    hidden = [(w, b.reshape(1, -1)) for w, b in hidden]
    head = (
        w_last[:, :latent_dim], b_last[:latent_dim].reshape(1, -1),
        w_last[:, latent_dim:], b_last[latent_dim:].reshape(1, -1),
    )
    return hidden, head


def encoder_forward(prepped, x, eps, *, block_b=1024):
    """Fused Pallas forward. Returns (sample, mean, std), each [B, latent_dim]."""
    hidden, head = prepped
    latent_dim = head[0].shape[1]
    B, in_dim = x.shape

    # Batch tile: multiple of 8 (f32 sublane). Large by default (the kernel is
    # DMA/overhead-bound at these widths) but capped at ceil(B/2) so the batch
    # grid has >= 2 "parallel" steps whenever possible (v7x dual-TC sharding).
    tb = min(block_b, _round_up(pl.cdiv(B, 2), _SUBLANE))
    tb = _round_up(max(tb, _SUBLANE), _SUBLANE)
    b_pad = _round_up(B, tb)
    if b_pad != B:
        # Row-only padding (no feature-dim rewrite); padded rows are sliced off.
        x = jnp.pad(x, ((0, b_pad - B), (0, 0)))
        eps = jnp.pad(eps, ((0, b_pad - B), (0, 0)))

    flat = [x, eps]
    in_specs = [
        pl.BlockSpec((tb, in_dim), lambda i: (i, 0)),
        pl.BlockSpec((tb, latent_dim), lambda i: (i, 0)),
    ]
    # Constant index_map -> weights/biases DMA'd once, VMEM-resident across all
    # batch grid steps.
    for w, b in hidden:
        flat += [w, b]
        in_specs += [
            pl.BlockSpec(w.shape, lambda i: (0, 0)),
            pl.BlockSpec(b.shape, lambda i: (0, 0)),
        ]
    for p in head:
        flat.append(p)
        in_specs.append(pl.BlockSpec(p.shape, lambda i: (0, 0)))

    out_shape = jax.ShapeDtypeStruct((b_pad, latent_dim), jnp.float32)
    out_spec = pl.BlockSpec((tb, latent_dim), lambda i: (i, 0))

    # Advisory cost estimate so XLA schedules surrounding ops (eps generation,
    # consumers of mean/std) around the custom call instead of serializing.
    widths = [in_dim] + [w.shape[1] for w, _ in hidden] + [2 * latent_dim]
    flops = 2 * b_pad * sum(widths[i] * widths[i + 1] for i in range(len(widths) - 1))
    transcendentals = b_pad * (sum(w.shape[1] for w, _ in hidden) + latent_dim)
    param_bytes = 4 * sum(int(p.size) for p in flat[2:])
    io_bytes = 4 * b_pad * (in_dim + latent_dim + 3 * latent_dim) + param_bytes

    # VMEM budget: double-buffered batch tiles + resident params + activation
    # headroom; clamp to [32 MiB, 64 MiB] so it is valid on every generation
    # (v5e default scoped limit is only 16 MiB; v7x physical VMEM is 64 MiB).
    tile_bytes = 4 * tb * (in_dim + latent_dim + 3 * latent_dim)
    vmem_est = 2 * tile_bytes + 2 * param_bytes + 4 * 4 * tb * max(widths)
    vmem_limit = int(min(64 << 20, max(32 << 20, 2 * vmem_est)))

    kernel = functools.partial(_encoder_kernel, num_hidden=len(hidden))
    sample, mean, std = pl.pallas_call(
        kernel,
        grid=(b_pad // tb,),
        in_specs=in_specs,
        out_specs=(out_spec, out_spec, out_spec),
        out_shape=(out_shape, out_shape, out_shape),
        compiler_params=pltpu.CompilerParams(
            dimension_semantics=("parallel",),  # batch tiles shard across TCs
            vmem_limit_bytes=vmem_limit,
        ),
        cost_estimate=pl.CostEstimate(
            flops=int(flops),
            transcendentals=int(transcendentals),
            bytes_accessed=int(io_bytes),
        ),
    )(*flat)

    if b_pad != B:
        sample, mean, std = sample[:B], mean[:B], std[:B]
    return sample, mean, std


def encoder_ref(params, x, eps, latent_dim):
    """Pure-JAX reference (matches the PyTorch module semantics)."""
    h = x
    n = len(params)
    for i, (w, b) in enumerate(params):
        h = h @ w + b
        if i < n - 1:
            h = jnp.where(h > 0, h, jnp.exp(jnp.minimum(h, 0.0)) - 1.0)
    mean = h[:, :latent_dim]
    std = jnp.exp(h[:, latent_dim:])
    return mean + std * eps, mean, std


if __name__ == "__main__":
    # Small shapes consistent with the module:
    #   input_dim=40 -> mid_dims=(64, 64) -> 2*latent_dim=64, batch=16
    batch = 16
    input_dim = 40
    mid_dims = (64, 64)
    latent_dim = 32

    key = jax.random.PRNGKey(0)
    key, kx, keps = jax.random.split(key, 3)
    x = jax.random.normal(kx, (batch, input_dim), dtype=jnp.float32)
    eps = jax.random.normal(keps, (batch, latent_dim), dtype=jnp.float32)

    params = init_encoder_params(key, input_dim, latent_dim, mid_dims)
    prepped = prep_encoder_params(params, latent_dim)

    # With batch=16 the tile becomes 8 -> 2 grid steps (exercises the tiled,
    # dual-TC-parallel path); for big batches the tile grows up to block_b.
    fwd = jax.jit(functools.partial(encoder_forward, block_b=1024))
    sample, mean, std = fwd(prepped, x, eps)
    sample = jax.block_until_ready(sample)

    s_ref, m_ref, sd_ref = encoder_ref(params, x, eps, latent_dim)
    assert sample.shape == (batch, latent_dim), sample.shape
    assert mean.shape == (batch, latent_dim) and std.shape == (batch, latent_dim)
    assert jnp.allclose(mean, m_ref, atol=1e-4, rtol=1e-4), \
        f"mean max abs err = {jnp.max(jnp.abs(mean - m_ref))}"
    assert jnp.allclose(std, sd_ref, atol=1e-4, rtol=1e-4), \
        f"std max abs err = {jnp.max(jnp.abs(std - sd_ref))}"
    assert jnp.allclose(sample, s_ref, atol=1e-4, rtol=1e-4), \
        f"sample max abs err = {jnp.max(jnp.abs(sample - s_ref))}"

    print("KERNEL_OK")
</pallas_src>

<mosaic_0001>
module attributes {stable_mosaic.version = 11 : i64} {
  func.func @_encoder_kernel(%arg0: i32, %arg1: memref<8x40xf32, #tpu.memory_space<vmem>>, %arg2: memref<8x32xf32, #tpu.memory_space<vmem>>, %arg3: memref<40x64xf32, #tpu.memory_space<vmem>>, %arg4: memref<1x64xf32, #tpu.memory_space<vmem>>, %arg5: memref<64x64xf32, #tpu.memory_space<vmem>>, %arg6: memref<1x64xf32, #tpu.memory_space<vmem>>, %arg7: memref<64x32xf32, #tpu.memory_space<vmem>>, %arg8: memref<1x32xf32, #tpu.memory_space<vmem>>, %arg9: memref<64x32xf32, #tpu.memory_space<vmem>>, %arg10: memref<1x32xf32, #tpu.memory_space<vmem>>, %arg11: memref<8x32xf32, #tpu.memory_space<vmem>>, %arg12: memref<8x32xf32, #tpu.memory_space<vmem>>, %arg13: memref<8x32xf32, #tpu.memory_space<vmem>>) attributes {dimension_semantics = [#tpu.dimension_semantics<parallel>], iteration_bounds = array<i64: 2>, scalar_prefetch = 0 : i64, scratch_operands = 0 : i64, tpu.core_type = #tpu.core_type<tc>, window_params = [{transform_indices = @transform_0, window_bounds = array<i64: 8, 40>}, {transform_indices = @transform_1, window_bounds = array<i64: 8, 32>}, {pipeline_mode = #tpu.pipeline_mode<synchronous>, transform_indices = @transform_2, window_bounds = array<i64: 40, 64>}, {pipeline_mode = #tpu.pipeline_mode<synchronous>, transform_indices = @transform_3, window_bounds = array<i64: 1, 64>}, {pipeline_mode = #tpu.pipeline_mode<synchronous>, transform_indices = @transform_4, window_bounds = array<i64: 64, 64>}, {pipeline_mode = #tpu.pipeline_mode<synchronous>, transform_indices = @transform_5, window_bounds = array<i64: 1, 64>}, {pipeline_mode = #tpu.pipeline_mode<synchronous>, transform_indices = @transform_6, window_bounds = array<i64: 64, 32>}, {pipeline_mode = #tpu.pipeline_mode<synchronous>, transform_indices = @transform_7, window_bounds = array<i64: 1, 32>}, {pipeline_mode = #tpu.pipeline_mode<synchronous>, transform_indices = @transform_8, window_bounds = array<i64: 64, 32>}, {pipeline_mode = #tpu.pipeline_mode<synchronous>, transform_indices = @transform_9, window_bounds = array<i64: 1, 32>}, {transform_indices = @transform_10, window_bounds = array<i64: 8, 32>}, {transform_indices = @transform_11, window_bounds = array<i64: 8, 32>}, {transform_indices = @transform_12, window_bounds = array<i64: 8, 32>}]} {
    %c0 = arith.constant 0 : index
    %c0_0 = arith.constant 0 : index
    %0 = vector.load %arg1[%c0, %c0_0] : memref<8x40xf32, #tpu.memory_space<vmem>>, vector<8x40xf32>
    %c0_1 = arith.constant 0 : index
    %c0_2 = arith.constant 0 : index
    %1 = vector.load %arg3[%c0_1, %c0_2] : memref<40x64xf32, #tpu.memory_space<vmem>>, vector<40x64xf32>
    %c0_3 = arith.constant 0 : index
    %c0_4 = arith.constant 0 : index
    %2 = vector.load %arg4[%c0_3, %c0_4] : memref<1x64xf32, #tpu.memory_space<vmem>>, vector<1x64xf32>
    %cst = arith.constant dense<0.000000e+00> : vector<8x64xf32>
    %3 = tpu.matmul %0, %1, %cst {dimension_numbers = #tpu.dot_dimension_numbers<[1], [0], [0], [1], [0, 0, 1, 1], [], []>} : vector<8x40xf32>, vector<40x64xf32>, vector<8x64xf32> -> vector<8x64xf32>
    %4 = vector.broadcast %2 : vector<1x64xf32> to vector<8x64xf32>
    %5 = arith.addf %3, %4 : vector<8x64xf32>
    %cst_5 = arith.constant 0.000000e+00 : f32
    %6 = vector.broadcast %cst_5 : f32 to vector<8x64xf32>
    %7 = arith.cmpf ogt, %5, %6 : vector<8x64xf32>
    %cst_6 = arith.constant 0.000000e+00 : f32
    %8 = vector.broadcast %cst_6 : f32 to vector<8x64xf32>
    %9 = arith.minimumf %5, %8 : vector<8x64xf32>
    %10 = math.exp %9 : vector<8x64xf32>
    %cst_7 = arith.constant 1.000000e+00 : f32
    %11 = vector.broadcast %cst_7 : f32 to vector<8x64xf32>
    %12 = arith.subf %10, %11 : vector<8x64xf32>
    %13 = arith.select %7, %5, %12 : vector<8x64xi1>, vector<8x64xf32>
    %c0_8 = arith.constant 0 : index
    %c0_9 = arith.constant 0 : index
    %14 = vector.load %arg5[%c0_8, %c0_9] : memref<64x64xf32, #tpu.memory_space<vmem>>, vector<64x64xf32>
    %c0_10 = arith.constant 0 : index
    %c0_11 = arith.constant 0 : index
    %15 = vector.load %arg6[%c0_10, %c0_11] : memref<1x64xf32, #tpu.memory_space<vmem>>, vector<1x64xf32>
    %cst_12 = arith.constant dense<0.000000e+00> : vector<8x64xf32>
    %16 = tpu.matmul %13, %14, %cst_12 {dimension_numbers = #tpu.dot_dimension_numbers<[1], [0], [0], [1], [0, 0, 1, 1], [], []>} : vector<8x64xf32>, vector<64x64xf32>, vector<8x64xf32> -> vector<8x64xf32>
    %17 = vector.broadcast %15 : vector<1x64xf32> to vector<8x64xf32>
    %18 = arith.addf %16, %17 : vector<8x64xf32>
    %cst_13 = arith.constant 0.000000e+00 : f32
    %19 = vector.broadcast %cst_13 : f32 to vector<8x64xf32>
    %20 = arith.cmpf ogt, %18, %19 : vector<8x64xf32>
    %cst_14 = arith.constant 0.000000e+00 : f32
    %21 = vector.broadcast %cst_14 : f32 to vector<8x64xf32>
    %22 = arith.minimumf %18, %21 : vector<8x64xf32>
    %23 = math.exp %22 : vector<8x64xf32>
    %cst_15 = arith.constant 1.000000e+00 : f32
    %24 = vector.broadcast %cst_15 : f32 to vector<8x64xf32>
    %25 = arith.subf %23, %24 : vector<8x64xf32>
    %26 = arith.select %20, %18, %25 : vector<8x64xi1>, vector<8x64xf32>
    %c0_16 = arith.constant 0 : index
    %c0_17 = arith.constant 0 : index
    %27 = vector.load %arg7[%c0_16, %c0_17] : memref<64x32xf32, #tpu.memory_space<vmem>>, vector<64x32xf32>
    %c0_18 = arith.constant 0 : index
    %c0_19 = arith.constant 0 : index
    %28 = vector.load %arg8[%c0_18, %c0_19] : memref<1x32xf32, #tpu.memory_space<vmem>>, vector<1x32xf32>
    %c0_20 = arith.constant 0 : index
    %c0_21 = arith.constant 0 : index
    %29 = vector.load %arg9[%c0_20, %c0_21] : memref<64x32xf32, #tpu.memory_space<vmem>>, vector<64x32xf32>
    %c0_22 = arith.constant 0 : index
    %c0_23 = arith.constant 0 : index
    %30 = vector.load %arg10[%c0_22, %c0_23] : memref<1x32xf32, #tpu.memory_space<vmem>>, vector<1x32xf32>
    %cst_24 = arith.constant dense<0.000000e+00> : vector<8x32xf32>
    %31 = tpu.matmul %26, %27, %cst_24 {dimension_numbers = #tpu.dot_dimension_numbers<[1], [0], [0], [1], [0, 0, 1, 1], [], []>} : vector<8x64xf32>, vector<64x32xf32>, vector<8x32xf32> -> vector<8x32xf32>
    %32 = vector.broadcast %28 : vector<1x32xf32> to vector<8x32xf32>
    %33 = arith.addf %31, %32 : vector<8x32xf32>
    %cst_25 = arith.constant dense<0.000000e+00> : vector<8x32xf32>
    %34 = tpu.matmul %26, %29, %cst_25 {dimension_numbers = #tpu.dot_dimension_numbers<[1], [0], [0], [1], [0, 0, 1, 1], [], []>} : vector<8x64xf32>, vector<64x32xf32>, vector<8x32xf32> -> vector<8x32xf32>
    %35 = vector.broadcast %30 : vector<1x32xf32> to vector<8x32xf32>
    %36 = arith.addf %34, %35 : vector<8x32xf32>
    %37 = math.exp %36 : vector<8x32xf32>
    %c0_26 = arith.constant 0 : index
    %c0_27 = arith.constant 0 : index
    %38 = vector.load %arg2[%c0_26, %c0_27] : memref<8x32xf32, #tpu.memory_space<vmem>>, vector<8x32xf32>
    %39 = arith.mulf %37, %38 : vector<8x32xf32>
    %40 = arith.addf %33, %39 : vector<8x32xf32>
    %c0_28 = arith.constant 0 : index
    %c0_29 = arith.constant 0 : index
    %41 = vector.load %arg12[%c0_28, %c0_29] : memref<8x32xf32, #tpu.memory_space<vmem>>, vector<8x32xf32>
    tpu.vector_store %arg12[%c0_28, %c0_29], %33 {strides = array<i32>} : memref<8x32xf32, #tpu.memory_space<vmem>>, vector<8x32xf32>,
    %c0_30 = arith.constant 0 : index
    %c0_31 = arith.constant 0 : index
    %42 = vector.load %arg13[%c0_30, %c0_31] : memref<8x32xf32, #tpu.memory_space<vmem>>, vector<8x32xf32>
    tpu.vector_store %arg13[%c0_30, %c0_31], %37 {strides = array<i32>} : memref<8x32xf32, #tpu.memory_space<vmem>>, vector<8x32xf32>,
    %c0_32 = arith.constant 0 : index
    %c0_33 = arith.constant 0 : index
    %43 = vector.load %arg11[%c0_32, %c0_33] : memref<8x32xf32, #tpu.memory_space<vmem>>, vector<8x32xf32>
    tpu.vector_store %arg11[%c0_32, %c0_33], %40 {strides = array<i32>} : memref<8x32xf32, #tpu.memory_space<vmem>>, vector<8x32xf32>,
    return
  }
  func.func @transform_0(%arg0: i32) -> (i32, i32) {
    %c0_i32 = arith.constant 0 : i32
    %c0_i32_0 = arith.constant 0 : i32
    return %arg0, %c0_i32 : i32, i32
  }
  func.func @transform_1(%arg0: i32) -> (i32, i32) {
    %c0_i32 = arith.constant 0 : i32
    %c0_i32_0 = arith.constant 0 : i32
    return %arg0, %c0_i32 : i32, i32
  }
  func.func @transform_2(%arg0: i32) -> (i32, i32) {
    %c0_i32 = arith.constant 0 : i32
    %c0_i32_0 = arith.constant 0 : i32
    %c0_i32_1 = arith.constant 0 : i32
    return %c0_i32, %c0_i32_0 : i32, i32
  }
  func.func @transform_3(%arg0: i32) -> (i32, i32) {
    %c0_i32 = arith.constant 0 : i32
    %c0_i32_0 = arith.constant 0 : i32
    %c0_i32_1 = arith.constant 0 : i32
    return %c0_i32, %c0_i32_0 : i32, i32
  }
  func.func @transform_4(%arg0: i32) -> (i32, i32) {
    %c0_i32 = arith.constant 0 : i32
    %c0_i32_0 = arith.constant 0 : i32
    %c0_i32_1 = arith.constant 0 : i32
    return %c0_i32, %c0_i32_0 : i32, i32
  }
  func.func @transform_5(%arg0: i32) -> (i32, i32) {
    %c0_i32 = arith.constant 0 : i32
    %c0_i32_0 = arith.constant 0 : i32
    %c0_i32_1 = arith.constant 0 : i32
    return %c0_i32, %c0_i32_0 : i32, i32
  }
  func.func @transform_6(%arg0: i32) -> (i32, i32) {
    %c0_i32 = arith.constant 0 : i32
    %c0_i32_0 = arith.constant 0 : i32
    %c0_i32_1 = arith.constant 0 : i32
    return %c0_i32, %c0_i32_0 : i32, i32
  }
  func.func @transform_7(%arg0: i32) -> (i32, i32) {
    %c0_i32 = arith.constant 0 : i32
    %c0_i32_0 = arith.constant 0 : i32
    %c0_i32_1 = arith.constant 0 : i32
    return %c0_i32, %c0_i32_0 : i32, i32
  }
  func.func @transform_8(%arg0: i32) -> (i32, i32) {
    %c0_i32 = arith.constant 0 : i32
    %c0_i32_0 = arith.constant 0 : i32
    %c0_i32_1 = arith.constant 0 : i32
    return %c0_i32, %c0_i32_0 : i32, i32
  }
  func.func @transform_9(%arg0: i32) -> (i32, i32) {
    %c0_i32 = arith.constant 0 : i32
    %c0_i32_0 = arith.constant 0 : i32
    %c0_i32_1 = arith.constant 0 : i32
    return %c0_i32, %c0_i32_0 : i32, i32
  }
  func.func @transform_10(%arg0: i32) -> (i32, i32) {
    %c0_i32 = arith.constant 0 : i32
    %c0_i32_0 = arith.constant 0 : i32
    return %arg0, %c0_i32 : i32, i32
  }
  func.func @transform_11(%arg0: i32) -> (i32, i32) {
    %c0_i32 = arith.constant 0 : i32
    %c0_i32_0 = arith.constant 0 : i32
    return %arg0, %c0_i32 : i32, i32
  }
  func.func @transform_12(%arg0: i32) -> (i32, i32) {
    %c0_i32 = arith.constant 0 : i32
    %c0_i32_0 = arith.constant 0 : i32
    return %arg0, %c0_i32 : i32, i32
  }
}

</mosaic_0001>

<bundles_post_ra>
// kernel: encoder_forward.1
= control target key start
LH: loop header
LB: loop body
LE: loop exit
PB: predicated region body
PF: predicated region fallthrough
CT: control target
= control target key end

     0   :  { %s1744_s0 = inlined_call_operand.vmem [shape: f32[16,40], index: 0, kind: input, shape index: {}]   ;;  %s1745_s1 = inlined_call_operand.vmem [shape: f32[16,32], index: 1, kind: input, shape index: {}]   ;;  %s1746_s2 = inlined_call_operand.vmem [shape: f32[40,64], index: 2, kind: input, shape index: {}]   ;;  %s1747_s3 = inlined_call_operand.vmem [shape: f32[1,64], index: 3, kind: input, shape index: {}]   ;;  %s1748_s4 = inlined_call_operand.vmem [shape: f32[64,64], index: 4, kind: input, shape index: {}]   ;;  %s1749_s5 = inlined_call_operand.vmem [shape: f32[1,64], index: 5, kind: input, shape index: {}]   ;;  %s1750_s6 = inlined_call_operand.vmem [shape: f32[64,32], index: 6, kind: input, shape index: {}]   ;;  %s1751_s7 = inlined_call_operand.vmem [shape: f32[1,32], index: 7, kind: input, shape index: {}]   ;;  %s1752_s8 = inlined_call_operand.vmem [shape: f32[64,32], index: 8, kind: input, shape index: {}]   ;;  %s1753_s9 = inlined_call_operand.vmem [shape: f32[1,32], index: 9, kind: input, shape index: {}]   ;;  %s1754_s10 = inlined_call_operand.hbm [shape: f32[16,32], index: 10, kind: output, shape index: {0}]   ;;  %s1755_s11 = inlined_call_operand.hbm [shape: f32[16,32], index: 11, kind: output, shape index: {1}]   ;;  %s1756_s12 = inlined_call_operand.hbm [shape: f32[16,32], index: 12, kind: output, shape index: {2}]  }
   0x1   :  { %1760 = sst [smem:[#allocation9_spill]] %s1744_s0 }
   0x2   :  { %1761 = sst [smem:[#allocation10_spill]] %s1746_s2 }
   0x3   :  { %1762 = sst [smem:[#allocation11_spill]] %s1747_s3 }
   0x4   :  { %1763 = sst [smem:[#allocation12_spill]] %s1748_s4 }
   0x5   :  { %1764 = sst [smem:[#allocation13_spill]] %s1749_s5 }
   0x6   :  { %18 = vsyncpa [#allocation3], 0 }
   0x7   :  { %20 = vsyncpa [#allocation3 + $0x1], 0 }
   0x8   :  { %21 = vsyncpa [#allocation5], 0 }
   0x9   :  { %23 = vsyncpa [#allocation5 + $0x1], 0  ;;  %s1421_s21 = smov 0   ;;  %s1423_s22 = smov 0  }
   0xa   :  { %s1425_s23 = smov 0   ;;  %s1427_s24 = smov 0  }
   0xb LB: > { %s1442_s25 = sadd.s32 4294967295, %s1348_s24   ;;  %s1757_s26 = sadd.s32 4294967294, %s1348_s24   ;;  %s1348_s24 = sphi %s1427_s24, %s1778_s24   ;;  %s1344_s23 = sphi %s1425_s23, %s1777_s23   ;;  %s1340_s22 = sphi %s1423_s22, %s1776_s22   ;;  %s1336_s21 = sphi %s1421_s21, %s1775_s21  }
   0xc   : > { %s1446_s27 = sadd.s32 1, %s1348_s24   ;;  %s256_s28 = sadd.s32 1, %s1344_s23 }
   0xd   : > { %s253_s29 = ssub.s32 %s1348_s24, %s1446_s27  ;;  %p266_p0 = scmp.ne.s32.totalorder %s1344_s23, %s1340_s22 }
   0xe   : > { %p254_p1 = scmp.eq.s32.totalorder %s253_s29, 0  ;;  %p267_p2 = scmp.eq.s32.totalorder %s1442_s25, 1 }
   0xf   : > { %p272_p3 = scmp.ne.s32.totalorder %s1340_s22, %s1336_s21  ;;  %p273_p4 = scmp.eq.s32.totalorder %s1757_s26, 1 }
  0x10   : > { %s1459_s30 = scalar_select %p254_p1, %s1344_s23, %s256_s28  }
  0x11   : > { %p1461_p5 = por %p267_p2, %p266_p0  ;;  %p1465_p6 = por %p273_p4, %p272_p3 }
  0x12   : > { %p999_p7 = scmp.ge.s32.totalorder %s1348_s24, 1  ;;  %p381_p8 = scmp.lt.s32.totalorder %s1348_s24, 3 }
  0x14   : > { %p382_p9 = pnand %p999_p7, %p381_p8 }
  0x15   : > { %s1767_s2 = sld [smem:[#allocation10_spill]] (!%p382_p9)  ;;  %v1350_v3 = vmov (!%p382_p9), 0.0|0.0   ;;  %vm1351_vm0 = vmmov (!%p382_p9), 0   ;;  %v1352_v6 = vmov (!%p382_p9), 0.0   ;;  %p436_p10 = scmp.lt.s32.totalorder (!%p382_p9), %s1442_s25, 1  ;;  %vm457_vm1 = vcmask (!%p382_p9), 326656  }
  0x16   : > { %385 = sbr.rel (%p382_p9) target bundleno = 781 (0x30d), region = 60  ;;  %1126 = vmatprep.subr.bf16.mxu0 (!%p382_p9), %v1350_v3  ;;  %1066 = vmatprep.mubr.msk.f32.mxu0 (!%p382_p9), %vm1351_vm0, %v1352_v6  ;;  %s1768_s0 = sld [smem:[#allocation9_spill]] (!%p382_p9)  ;;  %vm552_vm2 = vcmask (!%p382_p9), 523264   ;;  %v632_v31 = vld [vmem:[%s1750_s6] sm:$0xff] (!%p382_p9)  ;;  %v633_v32 = vld [vmem:[%s1750_s6 + $0x8] sm:$0xff] (!%p382_p9)  ;;  %v634_v37 = vld [vmem:[%s1750_s6 + $0x10] sm:$0xff] (!%p382_p9) }
  0x17   : > { %1132 = vmatprep.subr.bf16.mxu1 (!%p382_p9), %v1350_v3  ;;  %1085 = vmatprep.mubr.msk.f32.mxu1 (!%p382_p9), %vm1351_vm0, %v1352_v6  ;;  %s1769_s4 = sld [smem:[#allocation12_spill]] (!%p382_p9)  ;;  %s1770_s3 = sld [smem:[#allocation11_spill]] (!%p382_p9)  ;;  %v641_v33 = vld [vmem:[%s1752_s8] sm:$0xff] (!%p382_p9)  ;;  %v1145_v34 = vpack.c.bf16 (!%p382_p9), %v633_v32, %v632_v31  ;;  %v642_v35 = vld [vmem:[%s1752_s8 + $0x8] sm:$0xff] (!%p382_p9)  ;;  %v635_v38 = vld [vmem:[%s1750_s6 + $0x18] sm:$0xff] (!%p382_p9)  ;;  %vm810_vm5 = vcmask (!%p382_p9), 261120  }
  0x18   : > { %v1157_v36 = vpack.c.bf16 (!%p382_p9), %v642_v35, %v641_v33  ;;  %v643_v39 = vld [vmem:[%s1752_s8 + $0x10] sm:$0xff] (!%p382_p9)  ;;  %v1148_v40 = vpack.c.bf16 (!%p382_p9), %v635_v38, %v634_v37  ;;  %v644_v41 = vld [vmem:[%s1752_s8 + $0x18] sm:$0xff] (!%p382_p9)  ;;  %v636_v43 = vld [vmem:[%s1750_s6 + $0x20] sm:$0xff] (!%p382_p9)  ;;  %s1771_s5 = sld [smem:[#allocation13_spill]] (!%p382_p9)  ;;  %s1759_s17 = sand.u32 (!%p382_p9), 1, %s1340_s22  }
  0x19   : > { %v1160_v42 = vpack.c.bf16 (!%p382_p9), %v644_v41, %v643_v39  ;;  %v637_v44 = vld [vmem:[%s1750_s6 + $0x28] sm:$0xff] (!%p382_p9)  ;;  %v645_v45 = vld [vmem:[%s1752_s8 + $0x20] sm:$0xff] (!%p382_p9)  ;;  %v638_v49 = vld [vmem:[%s1750_s6 + $0x30] sm:$0xff] (!%p382_p9)  ;;  %s1598_s18 = sshll.u32 (!%p382_p9), %s1759_s17, 3  ;;  %s1608_s28 = sshll.u32 (!%p382_p9), %s1442_s25, 7 }
  0x1a   : > { %v1151_v46 = vpack.c.bf16 (!%p382_p9), %v637_v44, %v636_v43  ;;  %v646_v47 = vld [vmem:[%s1752_s8 + $0x28] sm:$0xff] (!%p382_p9)  ;;  %v639_v50 = vld [vmem:[%s1750_s6 + $0x38] sm:$0xff] (!%p382_p9)  ;;  %v647_v51 = vld [vmem:[%s1752_s8 + $0x30] sm:$0xff] (!%p382_p9)  ;;  %s428_s26 = scalar_lea.vmem (!%p382_p9), [#allocation4], %s1598_s18  ;;  %s1617_s17 = scalar_lea.hbm (!%p382_p9), %s1755_s11, %s1608_s28 }
  0x1b   : > { %v445_v0 = vld [vmem:[%s1767_s2] sm:$0xff] (!%p382_p9)  ;;  %v446_v1 = vld [vmem:[%s1767_s2 + $0x8] sm:$0xff] (!%p382_p9)  ;;  %v447_v2 = vld [vmem:[%s1767_s2 + $0x10] sm:$0xff] (!%p382_p9)  ;;  %v1163_v48 = vpack.c.bf16 (!%p382_p9), %v646_v47, %v645_v45  ;;  %v1154_v52 = vpack.c.bf16 (!%p382_p9), %v639_v50, %v638_v49  ;;  %s851_s29 = sshll.u32 (!%p382_p9), %s428_s26, 4  ;;  %s1353_s20 = smov (!%p382_p9), [#allocation4]   ;;  %s1619_s29 = int_to_ptr.vmem [resolvable:$true] %s851_s29 }
  0x1c   : > { %v1127_v4 = vpack.c.bf16 (!%p382_p9), %v446_v1, %v445_v0  ;;  %v448_v5 = vld [vmem:[%s1767_s2 + $0x18] sm:$0xff] (!%p382_p9)  ;;  %v449_v8 = vld [vmem:[%s1767_s2 + $0x20] sm:$0xff] (!%p382_p9)  ;;  %s1226_s2 = scalar_lea.vmem (!%p382_p9), %s1619_s29, 128 }
  0x1d   : > { %v1130_v7 = vpack.c.bf16 %v448_v5, %v447_v2  ;;  %s1489_s15 = scalar_select %p436_p10, %s1442_s25, 1  ;;  %v537_v10 = vld [vmem:[%s1769_s4] sm:$0xff]  ;;  %v538_v11 = vld [vmem:[%s1769_s4 + $0x8] sm:$0xff]  ;;  %v539_v13 = vld [vmem:[%s1769_s4 + $0x10] sm:$0xff] }
  0x1e   : > { %1128 = vmatpush3.bf16.msra.mxu0 %v1127_v4  ;;  %v1133_v12 = vpack.c.bf16 %v538_v11, %v537_v10  ;;  %v540_v14 = vld [vmem:[%s1769_s4 + $0x18] sm:$0xff]  ;;  %v541_v15 = vld [vmem:[%s1769_s4 + $0x20] sm:$0xff]  ;;  %v542_v17 = vld [vmem:[%s1769_s4 + $0x28] sm:$0xff]  ;;  %p1227_p11 = scmp.ne.s32.totalorder %s1619_s29, %s1226_s2 }
  0x1f   : > { %1129 = vmatprep.subr.bf16.mxu0 %v1350_v3  ;;  %s1758_s16 = sshll.u32 %s1489_s15, 3  ;;  %v1136_v16 = vpack.c.bf16 %v540_v14, %v539_v13  ;;  %v1139_v18 = vpack.c.bf16 %v542_v17, %v541_v15  ;;  %v543_v19 = vld [vmem:[%s1769_s4 + $0x30] sm:$0xff]  ;;  %v544_v20 = vld [vmem:[%s1769_s4 + $0x38] sm:$0xff]  ;;  %v1005_v22 = vld [vmem:[%s1770_s3] ss:$0 sm:$0xff] }
  0x20   : > { %s439_s19 = scalar_lea.vmem %s1768_s0, %s1758_s16  ;;  %1134 = vmatpush3.bf16.msra.mxu1 %v1133_v12  ;;  %v1142_v21 = vpack.c.bf16 %v544_v20, %v543_v19  ;;  %v648_v53 = vld [vmem:[%s1752_s8 + $0x38] sm:$0xff]  ;;  %v1008_v55 = vld [vmem:[%s1771_s5] ss:$0 sm:$0xff]  ;;  %p1228_p12 = pnand %p1227_p11, %p1461_p5 }
  0x21   : > { %v444_v9 = vld [vmem:[%s439_s19] sm:$0xff]  ;;  %1135 = vmatprep.subr.bf16.mxu1 %v1350_v3  ;;  %v1166_v54 = vpack.c.bf16 %v648_v53, %v647_v51  ;;  %s819_s19 = sand.u32 1, %s1442_s25   ;;  %s1230_s16 = sshll.u32 %s1353_s20, 4  ;;  %s1231_s16 = int_to_ptr.vmem [resolvable:$false] %s1230_s16 }
  0x22   : > { %1131 = vmatpush3.bf16.msra.mxu0 %v1130_v7  ;;  %v1011_v0 = vld [vmem:[%s1751_s7] ss:$0 sm:$0xff]  ;;  %s1623_s25 = scalar_lea.sflag [#allocation5], %s819_s19  ;;  %p1229_p13 = pneg %p1228_p12 }
  0x23   : > { %1064 = vmatprep.subr.mxu0 %v1352_v6  ;;  %v1013_v1 = vld [vmem:[%s1753_s9] ss:$0 sm:$0xff]  ;;  %s1232_s0 = scalar_lea.vmem %s1231_s16, 256  ;;  %p1233_p0 = scmp.lt.s32.totalorder %s1619_s29, %s1231_s16 }
  0x24   : > { %1137 = vmatpush3.bf16.msra.mxu1 %v1136_v16  ;;  %p1234_p1 = scmp.lt.s32.totalorder %s1232_s0, %s1226_s2 }
  0x25   : > { %1138 = vmatprep.subr.bf16.mxu1 %v1350_v3 }
  0x26   : > { %1065 = vmatpush3.msra.mxu0 %v449_v8  ;;  %p1235_p2 = por %p1234_p1, %p1233_p0 }
  0x27   : > { %1067 = vmatmul.mubr.msk.f32.vlgmr.msra.gmra.mrb[0].mxu0 %vm457_vm1, %v444_v9  ;;  %1144 = vmatprep.subr.bf16.mxu0 %v1350_v3 }
  0x28   : > { %1104 = vmatprep.mubr.msk.f32.mxu0 %vm1351_vm0, %v1352_v6  ;;  %1140 = vmatpush3.bf16.msra.mxu1 %v1139_v18  ;;  %p1236_p3 = pnand %p1235_p2, %p1229_p13 }
  0x29   : > { %1141 = vmatprep.subr.bf16.mxu1 %v1350_v3  ;;  %1146 = vmatpush3.bf16.msra.mxu0 %v1145_v34 }
  0x2a   : > { %1147 = vmatprep.subr.bf16.mxu0 %v1350_v3 }
  0x2c   : > { %1143 = vmatpush3.bf16.msra.mxu1 %v1142_v21 }
  0x2d   : > { %1156 = vmatprep.subr.bf16.mxu1 %v1350_v3  ;;  %1149 = vmatpush3.bf16.msra.mxu0 %v1148_v40 }
  0x2e   : > { %1150 = vmatprep.subr.bf16.mxu0 %v1350_v3 }
  0x31   : > { %1152 = vmatpush3.bf16.msra.mxu0 %v1151_v46 }
  0x32   : > { %1153 = vmatprep.subr.bf16.mxu0 %v1350_v3 }
  0x35   : > { %1155 = vmatpush3.bf16.msra.mxu0 %v1154_v52 }
  0xfa   : > { %v527_v23 = vpop.f32.mrb[0].mxu0 }
  0xfb   : > { %v528_v24 = vadd.f32 %v1005_v22, %v527_v23  ;;  %v1068_v25 = vpop.f32.mrb[1].mxu0 }
  0xfd   : > { %v532_v26 = vmin.f32 %v528_v24, 0.0  ;;  %vm531_vm3 = vcmp.gt.f32.partialorder %v528_v24, 0.0 }
  0xff   : > { %v533_v27 = vmul.f32 1.442695, %v532_v26 }
 0x101   : > { %1220 = vpow2.f32 %v533_v27 }
 0x10b   : > { %v1221_v28 = vpop.eup %1220 }
 0x10c   : > { %v1007_v29 = vadd.f32 -1.0, %v1221_v28 }
 0x10e   : > { %v536_v30 = vsel %vm531_vm3, %v528_v24, %v1007_v29 }
 0x10f   : > { %1086 = vmatmul.mubr.msk.f32.vlgmr.msra.gmra.mrb[0].mxu1 %vm552_vm2, %v536_v30 }
 0x110   : > { %1123 = vmatprep.mubr.msk.f32.mxu1 %vm1351_vm0, %v1352_v6  ;;  %1158 = vmatpush3.bf16.msra.mxu1 %v1157_v36 }
 0x111   : > { %1159 = vmatprep.subr.bf16.mxu1 %v1350_v3 }
 0x114   : > { %1161 = vmatpush3.bf16.msra.mxu1 %v1160_v42 }
 0x115   : > { %1162 = vmatprep.subr.bf16.mxu1 %v1350_v3 }
 0x118   : > { %1164 = vmatpush3.bf16.msra.mxu1 %v1163_v48 }
 0x119   : > { %1165 = vmatprep.subr.bf16.mxu1 %v1350_v3 }
 0x11c   : > { %1167 = vmatpush3.bf16.msra.mxu1 %v1166_v54 }
 0x1e2   : > { %v622_v56 = vpop.f32.mrb[0].mxu1 }
 0x1e3   : > { %v623_v57 = vadd.f32 %v1008_v55, %v622_v56  ;;  %v1087_v58 = vpop.f32.mrb[1].mxu1 }
 0x1e5   : > { %v627_v59 = vmin.f32 %v623_v57, 0.0  ;;  %vm626_vm4 = vcmp.gt.f32.partialorder %v623_v57, 0.0 }
 0x1e7   : > { %v628_v60 = vmul.f32 1.442695, %v627_v59 }
 0x1e9   : > { %1222 = vpow2.f32 %v628_v60 }
 0x1f3   : > { %v1223_v61 = vpop.eup %1222 }
 0x1f4   : > { %v1010_v62 = vadd.f32 -1.0, %v1223_v61 }
 0x1f6   : > { %v631_v63 = vsel %vm626_vm4, %v623_v57, %v1010_v62 }
 0x1f7   : > { %1105 = vmatmul.mubr.msk.f32.vlgmr.msra.gmra.mrb[2].mxu0 %vm552_vm2, %v631_v63  ;;  %1124 = vmatmul.mubr.msk.f32.vlgmr.msra.gmra.mrb[2].mxu1 %vm552_vm2, %v631_v63 }
 0x2ca   : > { %v725_v2 = vpop.f32.mrb[2].mxu0  ;;  %v801_v3 = vpop.f32.mrb[2].mxu1 }
 0x2cb   : > { %v1611_v4 = vadd.f32 %v1011_v0, %v725_v2  ;;  %v802_v5 = vadd.f32 %v1013_v1, %v801_v3  ;;  %v1106_v6 = vpop.f32.mrb[3].mxu0  ;;  %v1125_v7 = vpop.f32.mrb[3].mxu1 }
 0x2cd   : > { %v805_v8 = vmul.f32 1.442695, %v802_v5  ;;  %811 = vst.msk [vmem:[%s428_s26] sm:$0xff] %vm810_vm5, %v1611_v4 }
 0x2ce   : > { %1239 = shalt.err (!%p1236_p3)
}
 0x2cf   : > { %s1240_s19 = scalar_lea.hbm %s1617_s17, 128  ;;  %s1244_s20 = scalar_lea.hbm %s1755_s11, 256 }
 0x2d0   : > { %p1241_p4 = scmp.ne.s32.totalorder %s1617_s17, %s1240_s19  ;;  %p1245_p9 = scmp.lt.u32.totalorder %s1617_s17, %s1755_s11 }
 0x2d1   : > { %p1246_p10 = scmp.lt.u32.totalorder %s1244_s20, %s1240_s19  ;;  %p1248_p12 = scmp.lt.u32.totalorder %s1240_s19, %s1617_s17 }
 0x2d2   : > { %p1242_p7 = pnand %p1241_p4, %p1461_p5 }
 0x2d3   : > { %p1247_p11 = por %p1246_p10, %p1245_p9 }
 0x2d4   : > { %p1243_p8 = pneg %p1242_p7 }
 0x2d5   : > { %p1249_p13 = por %p1248_p12, %p1247_p11 }
 0x2d7   : > { %p1250_p0 = pnand %p1249_p13, %p1243_p8 }
 0x2d9   : > { %1253 = shalt.err (!%p1250_p0)
}
 0x2da   : > { %1169 = dma.vmem_to_hbm [thread:$0]  (%p1461_p5), %s1619_s29, 128, %s1617_s17, %s1623_s25   ;;  %1224 = vpow2.f32 %v805_v8 }
 0x2db   : > { %s1772_s3 = sshll.u32 %s1489_s15, 3  ;;  %s435_s19 = scalar_lea.vmem [#allocation6], %s1598_s18 }
 0x2dc   : > { %s443_s0 = scalar_lea.vmem %s1745_s1, %s1772_s3  ;;  %s864_s26 = sshll.u32 %s435_s19, 4  ;;  %s1659_s26 = int_to_ptr.vmem [resolvable:$true] %s864_s26 }
 0x2dd   : > { %v807_v9 = vld [vmem:[%s443_s0] sm:$0xff]  ;;  %s1657_s5 = scalar_lea.hbm %s1756_s12, %s1608_s28  ;;  %s421_s17 = scalar_lea.vmem [#allocation2], %s1598_s18 }
 0x2de   : > { %s1664_s15 = sshll.u32 %s421_s17, 4  ;;  %s1254_s29 = scalar_lea.vmem %s1659_s26, 128  ;;  %s1697_s15 = int_to_ptr.vmem [resolvable:$true] %s1664_s15 }
 0x2df   : > { %p1255_p1 = scmp.ne.s32.totalorder %s1659_s26, %s1254_s29  ;;  %s1354_s3 = smov [#allocation6]  }
 0x2e0   : > { %s1258_s4 = sshll.u32 %s1354_s3, 4  ;;  %s1259_s4 = int_to_ptr.vmem [resolvable:$false] %s1258_s4 }
 0x2e1   : > { %p1256_p2 = pnand %p1255_p1, %p1461_p5  ;;  %s1260_s2 = scalar_lea.vmem %s1259_s4, 256 }
 0x2e2   : > { %p1261_p4 = scmp.lt.s32.totalorder %s1659_s26, %s1259_s4  ;;  %p1262_p7 = scmp.lt.s32.totalorder %s1260_s2, %s1254_s29 }
 0x2e3   : > { %p1257_p3 = pneg %p1256_p2 }
 0x2e4   : > { %v1225_v10 = vpop.eup %1224  ;;  %p1263_p8 = por %p1262_p7, %p1261_p4 }
 0x2e5   : > { %v808_v11 = vmul.f32 %v1225_v10, %v807_v9  ;;  %812 = vst.msk [vmem:[%s435_s19] sm:$0xff] %vm810_vm5, %v1225_v10 }
 0x2e6   : > { %p1264_p9 = pnand %p1263_p8, %p1257_p3 }
 0x2e8   : > { %1267 = shalt.err (!%p1264_p9)
}
 0x2e9   : > { %s1268_s0 = scalar_lea.hbm %s1657_s5, 128  ;;  %s1272_s16 = scalar_lea.hbm %s1756_s12, 256 }
 0x2ea   : > { %p1269_p10 = scmp.ne.s32.totalorder %s1657_s5, %s1268_s0  ;;  %p1273_p13 = scmp.lt.u32.totalorder %s1657_s5, %s1756_s12 }
 0x2eb   : > { %p1274_p0 = scmp.lt.u32.totalorder %s1272_s16, %s1268_s0  ;;  %p1276_p2 = scmp.lt.u32.totalorder %s1268_s0, %s1657_s5 }
 0x2ec   : > { %p1270_p11 = pnand %p1269_p10, %p1461_p5 }
 0x2ed   : > { %p1275_p1 = por %p1274_p0, %p1273_p13 }
 0x2ee   : > { %p1271_p12 = pneg %p1270_p11 }
 0x2ef   : > { %p1277_p3 = por %p1276_p2, %p1275_p1 }
 0x2f1   : > { %p1278_p4 = pnand %p1277_p3, %p1271_p12 }
 0x2f3   : > { %1281 = shalt.err (!%p1278_p4)
}
 0x2f4   : > { %1170 = dma.vmem_to_hbm [thread:$0]  (%p1461_p5), %s1659_s26, 128, %s1657_s5, %s1623_s25   ;;  %v809_v12 = vadd.f32 %v808_v11, %v1611_v4 }
 0x2f5   : > { %s1694_s0 = scalar_lea.hbm %s1754_s10, %s1608_s28  ;;  %s1773_s19 = sand.u32 1, %s1340_s22  }
 0x2f6   : > { %813 = vst.msk [vmem:[%s421_s17] sm:$0xff] %vm810_vm5, %v809_v12  ;;  %s815_s20 = scalar_lea.sflag [#allocation3], %s1773_s19  ;;  %s1282_s16 = scalar_lea.vmem %s1697_s15, 128 }
 0x2f7   : > { %p1283_p7 = scmp.ne.s32.totalorder %s1697_s15, %s1282_s16  ;;  %s1355_s5 = smov [#allocation2]  }
 0x2f8   : > { %s1286_s25 = sshll.u32 %s1355_s5, 4  ;;  %s1287_s25 = int_to_ptr.vmem [resolvable:$false] %s1286_s25 }
 0x2f9   : > { %p1284_p8 = pnand %p1283_p7, %p1461_p5  ;;  %s1288_s28 = scalar_lea.vmem %s1287_s25, 256 }
 0x2fa   : > { %p1289_p10 = scmp.lt.s32.totalorder %s1697_s15, %s1287_s25  ;;  %p1290_p11 = scmp.lt.s32.totalorder %s1288_s28, %s1282_s16 }
 0x2fb   : > { %p1285_p9 = pneg %p1284_p8 }
 0x2fc   : > { %p1291_p12 = por %p1290_p11, %p1289_p10 }
 0x2fe   : > { %p1292_p13 = pnand %p1291_p12, %p1285_p9 }
 0x300   : > { %1295 = shalt.err (!%p1292_p13)
}
 0x301   : > { %s1296_s18 = scalar_lea.hbm %s1694_s0, 128  ;;  %s1300_s3 = scalar_lea.hbm %s1754_s10, 256 }
 0x302   : > { %p1297_p0 = scmp.ne.s32.totalorder %s1694_s0, %s1296_s18  ;;  %p1301_p3 = scmp.lt.u32.totalorder %s1694_s0, %s1754_s10 }
 0x303   : > { %p1302_p4 = scmp.lt.u32.totalorder %s1300_s3, %s1296_s18  ;;  %p1304_p8 = scmp.lt.u32.totalorder %s1296_s18, %s1694_s0 }
 0x304   : > { %p1298_p1 = pnand %p1297_p0, %p1461_p5 }
 0x305   : > { %p1303_p7 = por %p1302_p4, %p1301_p3 }
 0x306   : > { %p1299_p2 = pneg %p1298_p1 }
 0x307   : > { %p1305_p9 = por %p1304_p8, %p1303_p7 }
 0x309   : > { %p1306_p10 = pnand %p1305_p9, %p1299_p2 }
 0x30b   : > { %1309 = shalt.err (!%p1306_p10)
}
 0x30c   : > { %1168 = dma.vmem_to_hbm [thread:$0]  (%p1461_p5), %s1697_s15, 128, %s1694_s0, %s815_s20  }
 0x30d PF: > { %p1184_p11 = scmp.ge.s32.totalorder %s1348_s24, 2  ;;  %s876_s2 = sand.u32 1, %s1336_s21  }
 0x30e   : > { %s877_s19 = scalar_lea.sflag [#allocation3], %s876_s2 }
 0x30f   : > { %p1175_p12 = pnand %p1184_p11, %p1465_p6 }
 0x311   : > { %1327 = dma.done.wait (!%p1175_p12), %s877_s19, 128  }
 0x312   : > { %1329 = vsyncadd (!%p1175_p12), %s877_s19, 4294967168  ;;  %s1774_s16 = sadd.s32 4294967294, %s1348_s24  }
 0x313   : > { %s885_s5 = sand.u32 1, %s1774_s16  }
 0x314   : > { %s886_s25 = scalar_lea.sflag [#allocation5], %s885_s5 }
 0x315   : > { %1331 = dma.done.wait (!%p1175_p12), %s886_s25, 256  }
 0x316   : > { %1333 = vsyncadd (!%p1175_p12), %s886_s25, 4294967040  ;;  %p26_p5 = scmp.ge.s32.totalorder %s1446_s27, 4   ;;  %s1775_s21 = smov %s1340_s22 }
 0x317   : > { %s1776_s22 = smov %s1344_s23  ;;  %s1777_s23 = smov %s1459_s30 }
 0x318   : > { %s1778_s24 = smov %s1446_s27  ;;  %28 = sbr.rel (!%p26_p5) target bundleno = 11 (0xb), region = 130 }
 0x31f   :  { %900 = vsyncpa [#allocation3], 1 }
 0x320   :  { %902 = vsyncpa [#allocation3 + $0x1], 1 }
 0x321   :  { %903 = vsyncpa [#allocation5], 1 }
 0x322   :  { %905 = vsyncpa [#allocation5 + $0x1], 1 }

</bundles_post_ra>
